<compile_context>
chip_gen: v5e
topology: v5e:2x2
jax: 0.10.0
libtpu: 0.0.40
codegen_flags: <defaults>
</compile_context>

<pallas_src>
import numpy as np
import jax
import jax.numpy as jnp
from jax import lax
from jax.experimental import pallas as pl
from jax.experimental.pallas import tpu as pltpu

# ----------------------- small, module-consistent sizes ---------------------
B = 2                      # batch
N_CHANNS = 8               # n_channs (EEG electrodes / conv "height")
T = 64                     # time samples
BT = B * T                 # packed lane width (= 128, one full vreg row)
N_TIMEFILT = 2             # n_timeFilters
TIMEFILT_LEN = 5           # timeFilterLen (odd -> 'same' output length)
N_MSFILT = 2               # n_msFilters
MSFILT_LEN = 3             # msFilter_timeLen
DILATIONS = (1, 2, 4, 8)   # dilation_array
SEG_ATT = 8                # seg_att
TEMP = 1.0                 # temp
C_TOTAL = N_TIMEFILT * N_MSFILT * len(DILATIONS)     # n_msFilters_total = 16

N_GC = N_TIMEFILT * N_CHANNS                          # 16 im2col rows per tap
N_COLS = len(DILATIONS) * MSFILT_LEN * N_GC           # 192 im2col rows total
TPAD = (TIMEFILT_LEN - 1) // 2                        # 'same' pad of timeConv
APAD = SEG_ATT - 1                                    # causal pad of att stages


# ------------------------------- fused kernel --------------------------------
def _fused_kernel(x_ref, wt_ref, bt_ref, wms_ref, bms_ref, watt_ref, batt_ref,
                  wpt_ref, bpt_ref, o_ref, col_ref):
    # local time index of every packed lane (one per operand row-count)
    lt8 = lax.broadcasted_iota(jnp.int32, (N_CHANNS, BT), 1) % T
    lt16 = lax.broadcasted_iota(jnp.int32, (C_TOTAL, BT), 1) % T

    def shifted(v, s, lt):
        """value at local time (t + s); zero outside [0, T) of the same batch."""
        if s == 0:
            return v
        r = pltpu.roll(v, shift=(-s) % BT, axis=1)      # result[t] = v[t + s]
        if s > 0:
            return jnp.where(lt < T - s, r, 0.0)
        return jnp.where(lt >= -s, r, 0.0)

    # ---------------- timeConv ('same' zero pad) on full 128-lane slabs ------
    x = x_ref[...]                                               # (8, 128)
    x_sh = [shifted(x, k - TPAD, lt8) for k in range(TIMEFILT_LEN)]
    tc_rows = []
    for f in range(N_TIMEFILT):
        acc = jnp.zeros((N_CHANNS, BT), jnp.float32)
        for k in range(TIMEFILT_LEN):
            acc = acc + wt_ref[f, k] * x_sh[k]
        tc_rows.append(acc + bt_ref[f])
    tc = jnp.concatenate(tc_rows, axis=0)                        # (16, 128)

    # ------ im2col for all 4 dilated grouped msConvs: 12 full-width rows -----
    # each write is a sublane-aligned, unmasked full-lane store
    for i, d in enumerate(DILATIONS):
        lp = (d * (MSFILT_LEN - 1)) // 2
        for k in range(MSFILT_LEN):
            row0 = (i * MSFILT_LEN + k) * N_GC
            col_ref[row0:row0 + N_GC, :] = shifted(tc, k * d - lp, lt16)

    # ---------------- all msConv branches: ONE MXU contraction ---------------
    feat = jnp.dot(wms_ref[...], col_ref[...],
                   preferred_element_type=jnp.float32) + bms_ref[...]

    # ---------------- depthwise causal att_conv + relu -----------------------
    acc = jnp.zeros((C_TOTAL, BT), jnp.float32)
    for k in range(SEG_ATT):
        acc = acc + watt_ref[k] * shifted(feat, k - APAD, lt16)
    att = jnp.maximum(acc + batt_ref[...], 0.0)

    # ---------------- causal average pool (1/seg folded into w_pt) -----------
    pooled = att
    for j in range(1, SEG_ATT):
        pooled = pooled + shifted(att, -j, lt16)

    # ---------------- 1x1 pointConv + channel softmax + combine --------------
    logits = jnp.dot(wpt_ref[...], pooled,
                     preferred_element_type=jnp.float32) + bpt_ref[...]
    m = jnp.max(logits, axis=0, keepdims=True)
    e = jnp.exp(logits - m)
    att_w = e / jnp.sum(e, axis=0, keepdims=True)
    o_ref[...] = att_w * jnp.maximum(feat, 0.0)


# ------------------------------- wrapper --------------------------------------
@jax.jit
def conv_att_forward(x, params):
    # x: (B, 1, n_channs, T) NCHW  ->  (B, C_total, 1, T)   (saveFea=True path)

    # lane-pack the batch: (n_channs, B*T)
    x_packed = x[:, 0].transpose(1, 0, 2).reshape(N_CHANNS, BT)

    # --- trace-time weight prep: fold the 4 grouped/dilated msConvs into one
    #     block-sparse (C_TOTAL, N_COLS) matrix; fold 1/seg & 1/temp into the
    #     pointConv; pre-broadcast per-channel vectors to lane width 128.
    w_all = jnp.stack(params["w_ms"], axis=0)            # (i, g, k, m, c)
    eye_i = jnp.eye(len(DILATIONS), dtype=jnp.float32)
    eye_g = jnp.eye(N_TIMEFILT, dtype=jnp.float32)
    w_ms_big = jnp.einsum("ij,gh,igkmc->igmjkhc", eye_i, eye_g,
                          w_all).reshape(C_TOTAL, N_COLS)
    b_ms_b = jnp.broadcast_to(
        jnp.concatenate([b.reshape(-1) for b in params["b_ms"]])[:, None],
        (C_TOTAL, BT))
    w_att_b = jnp.broadcast_to(params["w_att"].T[:, :, None],
                               (SEG_ATT, C_TOTAL, BT))
    b_att_b = jnp.broadcast_to(params["b_att"].reshape(C_TOTAL, 1),
                               (C_TOTAL, BT))
    w_pt_eff = params["w_pt"] * (1.0 / (SEG_ATT * TEMP))
    b_pt_b = jnp.broadcast_to(params["b_pt"].reshape(C_TOTAL, 1) * (1.0 / TEMP),
                              (C_TOTAL, BT))

    out_slab = pl.pallas_call(
        _fused_kernel,
        out_shape=jax.ShapeDtypeStruct((C_TOTAL, BT), jnp.float32),
        in_specs=[
            pl.BlockSpec(memory_space=pltpu.MemorySpace.VMEM),   # x_packed
            pl.BlockSpec(memory_space=pltpu.MemorySpace.SMEM),   # w_t (2, 5)
            pl.BlockSpec(memory_space=pltpu.MemorySpace.SMEM),   # b_t (2,)
            pl.BlockSpec(memory_space=pltpu.MemorySpace.VMEM),   # w_ms_big
            pl.BlockSpec(memory_space=pltpu.MemorySpace.VMEM),   # b_ms_b
            pl.BlockSpec(memory_space=pltpu.MemorySpace.VMEM),   # w_att_b
            pl.BlockSpec(memory_space=pltpu.MemorySpace.VMEM),   # b_att_b
            pl.BlockSpec(memory_space=pltpu.MemorySpace.VMEM),   # w_pt_eff
            pl.BlockSpec(memory_space=pltpu.MemorySpace.VMEM),   # b_pt_b
        ],
        out_specs=pl.BlockSpec(memory_space=pltpu.MemorySpace.VMEM),
        scratch_shapes=[
            pltpu.VMEM((N_COLS, BT), jnp.float32),               # im2col
        ],
    )(x_packed, params["w_t"], params["b_t"], w_ms_big, b_ms_b,
      w_att_b, b_att_b, w_pt_eff, b_pt_b)

    # unpack the lane-packed (C, B*T) slab back to the PyTorch layout
    out = out_slab.reshape(C_TOTAL, B, T).transpose(1, 0, 2)
    return out[:, :, None, :]


# ------------------------- deterministic parameters --------------------------
def init_params(key):
    ks = jax.random.split(key, 10)
    sc = 0.3
    w_t = sc * jax.random.normal(ks[0], (N_TIMEFILT, TIMEFILT_LEN), jnp.float32)
    b_t = sc * jax.random.normal(ks[1], (N_TIMEFILT,), jnp.float32)
    w_ms, b_ms = [], []
    for i in range(len(DILATIONS)):
        w_ms.append(sc * jax.random.normal(
            ks[2 + i], (N_TIMEFILT, MSFILT_LEN, N_MSFILT, N_CHANNS), jnp.float32))
        b_ms.append(sc * jax.random.normal(
            jax.random.fold_in(ks[6], i), (N_TIMEFILT, N_MSFILT, 1), jnp.float32))
    w_att = sc * jax.random.normal(ks[7], (C_TOTAL, SEG_ATT), jnp.float32)
    b_att = sc * jax.random.normal(jax.random.fold_in(ks[7], 1),
                                   (C_TOTAL, 1), jnp.float32)
    w_pt = sc * jax.random.normal(ks[8], (C_TOTAL, C_TOTAL), jnp.float32)
    b_pt = sc * jax.random.normal(ks[9], (C_TOTAL, 1), jnp.float32)
    return dict(w_t=w_t, b_t=b_t, w_ms=w_ms, b_ms=b_ms,
                w_att=w_att, b_att=b_att, w_pt=w_pt, b_pt=b_pt)


# ------------------------- pure-JAX reference (check) ------------------------
def _conv2d(x, w, b, padding, dilation=(1, 1), groups=1):
    out = lax.conv_general_dilated(
        x, w, window_strides=(1, 1), padding=padding, rhs_dilation=dilation,
        dimension_numbers=("NCHW", "OIHW", "NCHW"),
        feature_group_count=groups, precision=lax.Precision.HIGHEST)
    return out + b.reshape(1, -1, 1, 1)


def reference_forward(x, params):
    pad = (TIMEFILT_LEN - 1) // 2
    wt = params["w_t"].reshape(N_TIMEFILT, 1, 1, TIMEFILT_LEN)
    out = _conv2d(x, wt, params["b_t"], padding=((0, 0), (pad, pad)))
    outs = []
    for i, d in enumerate(DILATIONS):
        p = d * (MSFILT_LEN - 1)
        lp = p // 2
        xb = jnp.pad(out, ((0, 0), (0, 0), (0, 0), (lp, p - lp)))
        wi = jnp.transpose(params["w_ms"][i], (0, 2, 3, 1)).reshape(
            N_TIMEFILT * N_MSFILT, 1, N_CHANNS, MSFILT_LEN)
        outs.append(_conv2d(xb, wi, params["b_ms"][i].reshape(-1),
                            padding=((0, 0), (0, 0)), dilation=(1, d),
                            groups=N_TIMEFILT))
    out = jnp.concatenate(outs, axis=1)                      # (B, C, 1, T)
    s = SEG_ATT
    xp = jnp.pad(out, ((0, 0), (0, 0), (0, 0), (s - 1, 0)))
    wa = params["w_att"].reshape(C_TOTAL, 1, 1, s)
    att = jnp.maximum(_conv2d(xp, wa, params["b_att"].reshape(-1),
                              padding=((0, 0), (0, 0)), groups=C_TOTAL), 0.0)
    ap = jnp.pad(att, ((0, 0), (0, 0), (0, 0), (s - 1, 0)))
    ones = jnp.ones((C_TOTAL, 1, 1, s), jnp.float32) / s
    pooled = _conv2d(ap, ones, jnp.zeros((C_TOTAL,), jnp.float32),
                     padding=((0, 0), (0, 0)), groups=C_TOTAL)
    wp = params["w_pt"].reshape(C_TOTAL, C_TOTAL, 1, 1)
    att2 = _conv2d(pooled, wp, params["b_pt"].reshape(-1),
                   padding=((0, 0), (0, 0)))
    att_w = jax.nn.softmax(att2 / TEMP, axis=1)
    return att_w * jnp.maximum(out, 0.0)


# ----------------------------------- main ------------------------------------
if __name__ == "__main__":
    key = jax.random.PRNGKey(0)
    kx, kp = jax.random.split(key)
    x = jax.random.normal(kx, (B, 1, N_CHANNS, T), jnp.float32)
    params = init_params(kp)

    out = conv_att_forward(x, params)
    out = jax.block_until_ready(out)
    assert out.shape == (B, C_TOTAL, 1, T), out.shape

    ref = reference_forward(x, params)
    err = float(jnp.max(jnp.abs(out - ref)))
    if not np.isfinite(err) or err > 5e-5:
        raise SystemExit(f"mismatch vs reference: max abs err = {err}")
    print("KERNEL_OK")
</pallas_src>

<mosaic_0001>
module attributes {stable_mosaic.version = 11 : i64} {
  func.func @_fused_kernel(%arg0: memref<8x128xf32, #tpu.memory_space<vmem>>, %arg1: memref<2x5xf32, #tpu.memory_space<smem>>, %arg2: memref<2xf32, #tpu.memory_space<smem>>, %arg3: memref<16x192xf32, #tpu.memory_space<vmem>>, %arg4: memref<16x128xf32, #tpu.memory_space<vmem>>, %arg5: memref<8x16x128xf32, #tpu.memory_space<vmem>>, %arg6: memref<16x128xf32, #tpu.memory_space<vmem>>, %arg7: memref<16x16xf32, #tpu.memory_space<vmem>>, %arg8: memref<16x128xf32, #tpu.memory_space<vmem>>, %arg9: memref<16x128xf32, #tpu.memory_space<vmem>>, %arg10: memref<192x128xf32, #tpu.memory_space<vmem>>) attributes {dimension_semantics = [], scalar_prefetch = 0 : i64, scratch_operands = 1 : i64, tpu.core_type = #tpu.core_type<tc>} {
    %0 = tpu.iota {dimensions = array<i32: 1>} : vector<8x128xi32>
    %c64_i32 = arith.constant 64 : i32
    %c0_i32 = arith.constant 0 : i32
    %1 = arith.cmpi eq, %c64_i32, %c0_i32 : i32
    %c1_i32 = arith.constant 1 : i32
    %2 = arith.select %1, %c1_i32, %c64_i32 : i32
    %3 = vector.broadcast %2 : i32 to vector<8x128xi32>
    %4 = arith.remsi %0, %3 : vector<8x128xi32>
    %c0_i32_0 = arith.constant 0 : i32
    %5 = vector.broadcast %c0_i32_0 : i32 to vector<8x128xi32>
    %6 = arith.cmpi ne, %4, %5 : vector<8x128xi32>
    %c0_i32_1 = arith.constant 0 : i32
    %7 = vector.broadcast %c0_i32_1 : i32 to vector<8x128xi32>
    %8 = arith.cmpi slt, %4, %7 : vector<8x128xi32>
    %c0_i32_2 = arith.constant 0 : i32
    %9 = arith.cmpi slt, %2, %c0_i32_2 : i32
    %10 = vector.broadcast %9 : i1 to vector<8x128xi1>
    %11 = vector.broadcast %10 : vector<8x128xi1> to vector<8x128xi1>
    %12 = arith.xori %8, %11 : vector<8x128xi1>
    %13 = arith.andi %12, %6 : vector<8x128xi1>
    %14 = vector.broadcast %2 : i32 to vector<8x128xi32>
    %15 = arith.addi %4, %14 : vector<8x128xi32>
    %16 = arith.select %13, %15, %4 : vector<8x128xi1>, vector<8x128xi32>
    %17 = tpu.iota {dimensions = array<i32: 1>} : vector<16x128xi32>
    %c64_i32_3 = arith.constant 64 : i32
    %c0_i32_4 = arith.constant 0 : i32
    %18 = arith.cmpi eq, %c64_i32_3, %c0_i32_4 : i32
    %c1_i32_5 = arith.constant 1 : i32
    %19 = arith.select %18, %c1_i32_5, %c64_i32_3 : i32
    %20 = vector.broadcast %19 : i32 to vector<16x128xi32>
    %21 = arith.remsi %17, %20 : vector<16x128xi32>
    %c0_i32_6 = arith.constant 0 : i32
    %22 = vector.broadcast %c0_i32_6 : i32 to vector<16x128xi32>
    %23 = arith.cmpi ne, %21, %22 : vector<16x128xi32>
    %c0_i32_7 = arith.constant 0 : i32
    %24 = vector.broadcast %c0_i32_7 : i32 to vector<16x128xi32>
    %25 = arith.cmpi slt, %21, %24 : vector<16x128xi32>
    %c0_i32_8 = arith.constant 0 : i32
    %26 = arith.cmpi slt, %19, %c0_i32_8 : i32
    %27 = vector.broadcast %26 : i1 to vector<16x128xi1>
    %28 = vector.broadcast %27 : vector<16x128xi1> to vector<16x128xi1>
    %29 = arith.xori %25, %28 : vector<16x128xi1>
    %30 = arith.andi %29, %23 : vector<16x128xi1>
    %31 = vector.broadcast %19 : i32 to vector<16x128xi32>
    %32 = arith.addi %21, %31 : vector<16x128xi32>
    %33 = arith.select %30, %32, %21 : vector<16x128xi1>, vector<16x128xi32>
    %c0 = arith.constant 0 : index
    %c0_9 = arith.constant 0 : index
    %34 = vector.load %arg0[%c0, %c0_9] : memref<8x128xf32, #tpu.memory_space<vmem>>, vector<8x128xf32>
    %c2_i32 = arith.constant 2 : i32
    %35 = tpu.dynamic_rotate %34 by %c2_i32 dim 1 : vector<8x128xf32>, i32 -> vector<8x128xf32>
    %c2_i32_10 = arith.constant 2 : i32
    %36 = vector.broadcast %c2_i32_10 : i32 to vector<8x128xi32>
    %37 = arith.cmpi sge, %16, %36 : vector<8x128xi32>
    %cst = arith.constant 0.000000e+00 : f32
    %38 = vector.broadcast %cst : f32 to vector<8x128xf32>
    %39 = arith.select %37, %35, %38 : vector<8x128xi1>, vector<8x128xf32>
    %c1_i32_11 = arith.constant 1 : i32
    %40 = tpu.dynamic_rotate %34 by %c1_i32_11 dim 1 : vector<8x128xf32>, i32 -> vector<8x128xf32>
    %c1_i32_12 = arith.constant 1 : i32
    %41 = vector.broadcast %c1_i32_12 : i32 to vector<8x128xi32>
    %42 = arith.cmpi sge, %16, %41 : vector<8x128xi32>
    %cst_13 = arith.constant 0.000000e+00 : f32
    %43 = vector.broadcast %cst_13 : f32 to vector<8x128xf32>
    %44 = arith.select %42, %40, %43 : vector<8x128xi1>, vector<8x128xf32>
    %c127_i32 = arith.constant 127 : i32
    %45 = tpu.dynamic_rotate %34 by %c127_i32 dim 1 : vector<8x128xf32>, i32 -> vector<8x128xf32>
    %c63_i32 = arith.constant 63 : i32
    %46 = vector.broadcast %c63_i32 : i32 to vector<8x128xi32>
    %47 = arith.cmpi slt, %16, %46 : vector<8x128xi32>
    %cst_14 = arith.constant 0.000000e+00 : f32
    %48 = vector.broadcast %cst_14 : f32 to vector<8x128xf32>
    %49 = arith.select %47, %45, %48 : vector<8x128xi1>, vector<8x128xf32>
    %c126_i32 = arith.constant 126 : i32
    %50 = tpu.dynamic_rotate %34 by %c126_i32 dim 1 : vector<8x128xf32>, i32 -> vector<8x128xf32>
    %c62_i32 = arith.constant 62 : i32
    %51 = vector.broadcast %c62_i32 : i32 to vector<8x128xi32>
    %52 = arith.cmpi slt, %16, %51 : vector<8x128xi32>
    %cst_15 = arith.constant 0.000000e+00 : f32
    %53 = vector.broadcast %cst_15 : f32 to vector<8x128xf32>
    %54 = arith.select %52, %50, %53 : vector<8x128xi1>, vector<8x128xf32>
    %cst_16 = arith.constant 0.000000e+00 : f32
    %55 = vector.broadcast %cst_16 : f32 to vector<8x128xf32>
    %c0_17 = arith.constant 0 : index
    %c0_18 = arith.constant 0 : index
    %56 = memref.load %arg1[%c0_17, %c0_18] : memref<2x5xf32, #tpu.memory_space<smem>>
    %57 = vector.broadcast %56 : f32 to vector<8x128xf32>
    %58 = arith.mulf %57, %39 : vector<8x128xf32>
    %59 = arith.addf %55, %58 : vector<8x128xf32>
    %c0_19 = arith.constant 0 : index
    %c1 = arith.constant 1 : index
    %60 = memref.load %arg1[%c0_19, %c1] : memref<2x5xf32, #tpu.memory_space<smem>>
    %61 = vector.broadcast %60 : f32 to vector<8x128xf32>
    %62 = arith.mulf %61, %44 : vector<8x128xf32>
    %63 = arith.addf %59, %62 : vector<8x128xf32>
    %c0_20 = arith.constant 0 : index
    %c2 = arith.constant 2 : index
    %64 = memref.load %arg1[%c0_20, %c2] : memref<2x5xf32, #tpu.memory_space<smem>>
    %65 = vector.broadcast %64 : f32 to vector<8x128xf32>
    %66 = arith.mulf %65, %34 : vector<8x128xf32>
    %67 = arith.addf %63, %66 : vector<8x128xf32>
    %c0_21 = arith.constant 0 : index
    %c3 = arith.constant 3 : index
    %68 = memref.load %arg1[%c0_21, %c3] : memref<2x5xf32, #tpu.memory_space<smem>>
    %69 = vector.broadcast %68 : f32 to vector<8x128xf32>
    %70 = arith.mulf %69, %49 : vector<8x128xf32>
    %71 = arith.addf %67, %70 : vector<8x128xf32>
    %c0_22 = arith.constant 0 : index
    %c4 = arith.constant 4 : index
    %72 = memref.load %arg1[%c0_22, %c4] : memref<2x5xf32, #tpu.memory_space<smem>>
    %73 = vector.broadcast %72 : f32 to vector<8x128xf32>
    %74 = arith.mulf %73, %54 : vector<8x128xf32>
    %75 = arith.addf %71, %74 : vector<8x128xf32>
    %c0_23 = arith.constant 0 : index
    %76 = memref.load %arg2[%c0_23] : memref<2xf32, #tpu.memory_space<smem>>
    %77 = vector.broadcast %76 : f32 to vector<8x128xf32>
    %78 = arith.addf %75, %77 : vector<8x128xf32>
    %cst_24 = arith.constant 0.000000e+00 : f32
    %79 = vector.broadcast %cst_24 : f32 to vector<8x128xf32>
    %c1_25 = arith.constant 1 : index
    %c0_26 = arith.constant 0 : index
    %80 = memref.load %arg1[%c1_25, %c0_26] : memref<2x5xf32, #tpu.memory_space<smem>>
    %81 = vector.broadcast %80 : f32 to vector<8x128xf32>
    %82 = arith.mulf %81, %39 : vector<8x128xf32>
    %83 = arith.addf %79, %82 : vector<8x128xf32>
    %c1_27 = arith.constant 1 : index
    %c1_28 = arith.constant 1 : index
    %84 = memref.load %arg1[%c1_27, %c1_28] : memref<2x5xf32, #tpu.memory_space<smem>>
    %85 = vector.broadcast %84 : f32 to vector<8x128xf32>
    %86 = arith.mulf %85, %44 : vector<8x128xf32>
    %87 = arith.addf %83, %86 : vector<8x128xf32>
    %c1_29 = arith.constant 1 : index
    %c2_30 = arith.constant 2 : index
    %88 = memref.load %arg1[%c1_29, %c2_30] : memref<2x5xf32, #tpu.memory_space<smem>>
    %89 = vector.broadcast %88 : f32 to vector<8x128xf32>
    %90 = arith.mulf %89, %34 : vector<8x128xf32>
    %91 = arith.addf %87, %90 : vector<8x128xf32>
    %c1_31 = arith.constant 1 : index
    %c3_32 = arith.constant 3 : index
    %92 = memref.load %arg1[%c1_31, %c3_32] : memref<2x5xf32, #tpu.memory_space<smem>>
    %93 = vector.broadcast %92 : f32 to vector<8x128xf32>
    %94 = arith.mulf %93, %49 : vector<8x128xf32>
    %95 = arith.addf %91, %94 : vector<8x128xf32>
    %c1_33 = arith.constant 1 : index
    %c4_34 = arith.constant 4 : index
    %96 = memref.load %arg1[%c1_33, %c4_34] : memref<2x5xf32, #tpu.memory_space<smem>>
    %97 = vector.broadcast %96 : f32 to vector<8x128xf32>
    %98 = arith.mulf %97, %54 : vector<8x128xf32>
    %99 = arith.addf %95, %98 : vector<8x128xf32>
    %c1_35 = arith.constant 1 : index
    %100 = memref.load %arg2[%c1_35] : memref<2xf32, #tpu.memory_space<smem>>
    %101 = vector.broadcast %100 : f32 to vector<8x128xf32>
    %102 = arith.addf %99, %101 : vector<8x128xf32>
    %103 = tpu.concatenate %78, %102 in 0 : vector<8x128xf32>, vector<8x128xf32> -> vector<16x128xf32>
    %c1_i32_36 = arith.constant 1 : i32
    %104 = tpu.dynamic_rotate %103 by %c1_i32_36 dim 1 : vector<16x128xf32>, i32 -> vector<16x128xf32>
    %c1_i32_37 = arith.constant 1 : i32
    %105 = vector.broadcast %c1_i32_37 : i32 to vector<16x128xi32>
    %106 = arith.cmpi sge, %33, %105 : vector<16x128xi32>
    %cst_38 = arith.constant 0.000000e+00 : f32
    %107 = vector.broadcast %cst_38 : f32 to vector<16x128xf32>
    %108 = arith.select %106, %104, %107 : vector<16x128xi1>, vector<16x128xf32>
    %c0_39 = arith.constant 0 : index
    %c0_40 = arith.constant 0 : index
    %109 = vector.load %arg10[%c0_39, %c0_40] : memref<192x128xf32, #tpu.memory_space<vmem>>, vector<16x128xf32>
    tpu.vector_store %arg10[%c0_39, %c0_40], %108 {strides = array<i32>} : memref<192x128xf32, #tpu.memory_space<vmem>>, vector<16x128xf32>,
    %c16 = arith.constant 16 : index
    %c0_41 = arith.constant 0 : index
    %110 = vector.load %arg10[%c16, %c0_41] : memref<192x128xf32, #tpu.memory_space<vmem>>, vector<16x128xf32>
    tpu.vector_store %arg10[%c16, %c0_41], %103 {strides = array<i32>} : memref<192x128xf32, #tpu.memory_space<vmem>>, vector<16x128xf32>,
    %c127_i32_42 = arith.constant 127 : i32
    %111 = tpu.dynamic_rotate %103 by %c127_i32_42 dim 1 : vector<16x128xf32>, i32 -> vector<16x128xf32>
    %c63_i32_43 = arith.constant 63 : i32
    %112 = vector.broadcast %c63_i32_43 : i32 to vector<16x128xi32>
    %113 = arith.cmpi slt, %33, %112 : vector<16x128xi32>
    %cst_44 = arith.constant 0.000000e+00 : f32
    %114 = vector.broadcast %cst_44 : f32 to vector<16x128xf32>
    %115 = arith.select %113, %111, %114 : vector<16x128xi1>, vector<16x128xf32>
    %c32 = arith.constant 32 : index
    %c0_45 = arith.constant 0 : index
    %116 = vector.load %arg10[%c32, %c0_45] : memref<192x128xf32, #tpu.memory_space<vmem>>, vector<16x128xf32>
    tpu.vector_store %arg10[%c32, %c0_45], %115 {strides = array<i32>} : memref<192x128xf32, #tpu.memory_space<vmem>>, vector<16x128xf32>,
    %c2_i32_46 = arith.constant 2 : i32
    %117 = tpu.dynamic_rotate %103 by %c2_i32_46 dim 1 : vector<16x128xf32>, i32 -> vector<16x128xf32>
    %c2_i32_47 = arith.constant 2 : i32
    %118 = vector.broadcast %c2_i32_47 : i32 to vector<16x128xi32>
    %119 = arith.cmpi sge, %33, %118 : vector<16x128xi32>
    %cst_48 = arith.constant 0.000000e+00 : f32
    %120 = vector.broadcast %cst_48 : f32 to vector<16x128xf32>
    %121 = arith.select %119, %117, %120 : vector<16x128xi1>, vector<16x128xf32>
    %c48 = arith.constant 48 : index
    %c0_49 = arith.constant 0 : index
    %122 = vector.load %arg10[%c48, %c0_49] : memref<192x128xf32, #tpu.memory_space<vmem>>, vector<16x128xf32>
    tpu.vector_store %arg10[%c48, %c0_49], %121 {strides = array<i32>} : memref<192x128xf32, #tpu.memory_space<vmem>>, vector<16x128xf32>,
    %c64 = arith.constant 64 : index
    %c0_50 = arith.constant 0 : index
    %123 = vector.load %arg10[%c64, %c0_50] : memref<192x128xf32, #tpu.memory_space<vmem>>, vector<16x128xf32>
    tpu.vector_store %arg10[%c64, %c0_50], %103 {strides = array<i32>} : memref<192x128xf32, #tpu.memory_space<vmem>>, vector<16x128xf32>,
    %c126_i32_51 = arith.constant 126 : i32
    %124 = tpu.dynamic_rotate %103 by %c126_i32_51 dim 1 : vector<16x128xf32>, i32 -> vector<16x128xf32>
    %c62_i32_52 = arith.constant 62 : i32
    %125 = vector.broadcast %c62_i32_52 : i32 to vector<16x128xi32>
    %126 = arith.cmpi slt, %33, %125 : vector<16x128xi32>
    %cst_53 = arith.constant 0.000000e+00 : f32
    %127 = vector.broadcast %cst_53 : f32 to vector<16x128xf32>
    %128 = arith.select %126, %124, %127 : vector<16x128xi1>, vector<16x128xf32>
    %c80 = arith.constant 80 : index
    %c0_54 = arith.constant 0 : index
    %129 = vector.load %arg10[%c80, %c0_54] : memref<192x128xf32, #tpu.memory_space<vmem>>, vector<16x128xf32>
    tpu.vector_store %arg10[%c80, %c0_54], %128 {strides = array<i32>} : memref<192x128xf32, #tpu.memory_space<vmem>>, vector<16x128xf32>,
    %c4_i32 = arith.constant 4 : i32
    %130 = tpu.dynamic_rotate %103 by %c4_i32 dim 1 : vector<16x128xf32>, i32 -> vector<16x128xf32>
    %c4_i32_55 = arith.constant 4 : i32
    %131 = vector.broadcast %c4_i32_55 : i32 to vector<16x128xi32>
    %132 = arith.cmpi sge, %33, %131 : vector<16x128xi32>
    %cst_56 = arith.constant 0.000000e+00 : f32
    %133 = vector.broadcast %cst_56 : f32 to vector<16x128xf32>
    %134 = arith.select %132, %130, %133 : vector<16x128xi1>, vector<16x128xf32>
    %c96 = arith.constant 96 : index
    %c0_57 = arith.constant 0 : index
    %135 = vector.load %arg10[%c96, %c0_57] : memref<192x128xf32, #tpu.memory_space<vmem>>, vector<16x128xf32>
    tpu.vector_store %arg10[%c96, %c0_57], %134 {strides = array<i32>} : memref<192x128xf32, #tpu.memory_space<vmem>>, vector<16x128xf32>,
    %c112 = arith.constant 112 : index
    %c0_58 = arith.constant 0 : index
    %136 = vector.load %arg10[%c112, %c0_58] : memref<192x128xf32, #tpu.memory_space<vmem>>, vector<16x128xf32>
    tpu.vector_store %arg10[%c112, %c0_58], %103 {strides = array<i32>} : memref<192x128xf32, #tpu.memory_space<vmem>>, vector<16x128xf32>,
    %c124_i32 = arith.constant 124 : i32
    %137 = tpu.dynamic_rotate %103 by %c124_i32 dim 1 : vector<16x128xf32>, i32 -> vector<16x128xf32>
    %c60_i32 = arith.constant 60 : i32
    %138 = vector.broadcast %c60_i32 : i32 to vector<16x128xi32>
    %139 = arith.cmpi slt, %33, %138 : vector<16x128xi32>
    %cst_59 = arith.constant 0.000000e+00 : f32
    %140 = vector.broadcast %cst_59 : f32 to vector<16x128xf32>
    %141 = arith.select %139, %137, %140 : vector<16x128xi1>, vector<16x128xf32>
    %c128 = arith.constant 128 : index
    %c0_60 = arith.constant 0 : index
    %142 = vector.load %arg10[%c128, %c0_60] : memref<192x128xf32, #tpu.memory_space<vmem>>, vector<16x128xf32>
    tpu.vector_store %arg10[%c128, %c0_60], %141 {strides = array<i32>} : memref<192x128xf32, #tpu.memory_space<vmem>>, vector<16x128xf32>,
    %c8_i32 = arith.constant 8 : i32
    %143 = tpu.dynamic_rotate %103 by %c8_i32 dim 1 : vector<16x128xf32>, i32 -> vector<16x128xf32>
    %c8_i32_61 = arith.constant 8 : i32
    %144 = vector.broadcast %c8_i32_61 : i32 to vector<16x128xi32>
    %145 = arith.cmpi sge, %33, %144 : vector<16x128xi32>
    %cst_62 = arith.constant 0.000000e+00 : f32
    %146 = vector.broadcast %cst_62 : f32 to vector<16x128xf32>
    %147 = arith.select %145, %143, %146 : vector<16x128xi1>, vector<16x128xf32>
    %c144 = arith.constant 144 : index
    %c0_63 = arith.constant 0 : index
    %148 = vector.load %arg10[%c144, %c0_63] : memref<192x128xf32, #tpu.memory_space<vmem>>, vector<16x128xf32>
    tpu.vector_store %arg10[%c144, %c0_63], %147 {strides = array<i32>} : memref<192x128xf32, #tpu.memory_space<vmem>>, vector<16x128xf32>,
    %c160 = arith.constant 160 : index
    %c0_64 = arith.constant 0 : index
    %149 = vector.load %arg10[%c160, %c0_64] : memref<192x128xf32, #tpu.memory_space<vmem>>, vector<16x128xf32>
    tpu.vector_store %arg10[%c160, %c0_64], %103 {strides = array<i32>} : memref<192x128xf32, #tpu.memory_space<vmem>>, vector<16x128xf32>,
    %c120_i32 = arith.constant 120 : i32
    %150 = tpu.dynamic_rotate %103 by %c120_i32 dim 1 : vector<16x128xf32>, i32 -> vector<16x128xf32>
    %c56_i32 = arith.constant 56 : i32
    %151 = vector.broadcast %c56_i32 : i32 to vector<16x128xi32>
    %152 = arith.cmpi slt, %33, %151 : vector<16x128xi32>
    %cst_65 = arith.constant 0.000000e+00 : f32
    %153 = vector.broadcast %cst_65 : f32 to vector<16x128xf32>
    %154 = arith.select %152, %150, %153 : vector<16x128xi1>, vector<16x128xf32>
    %c176 = arith.constant 176 : index
    %c0_66 = arith.constant 0 : index
    %155 = vector.load %arg10[%c176, %c0_66] : memref<192x128xf32, #tpu.memory_space<vmem>>, vector<16x128xf32>
    tpu.vector_store %arg10[%c176, %c0_66], %154 {strides = array<i32>} : memref<192x128xf32, #tpu.memory_space<vmem>>, vector<16x128xf32>,
    %c0_67 = arith.constant 0 : index
    %c0_68 = arith.constant 0 : index
    %156 = vector.load %arg3[%c0_67, %c0_68] : memref<16x192xf32, #tpu.memory_space<vmem>>, vector<16x192xf32>
    %c0_69 = arith.constant 0 : index
    %c0_70 = arith.constant 0 : index
    %157 = vector.load %arg10[%c0_69, %c0_70] : memref<192x128xf32, #tpu.memory_space<vmem>>, vector<192x128xf32>
    %cst_71 = arith.constant dense<0.000000e+00> : vector<16x128xf32>
    %158 = tpu.matmul %156, %157, %cst_71 {dimension_numbers = #tpu.dot_dimension_numbers<[1], [0], [0], [1], [0, 0, 1, 1], [], []>} : vector<16x192xf32>, vector<192x128xf32>, vector<16x128xf32> -> vector<16x128xf32>
    %c0_72 = arith.constant 0 : index
    %c0_73 = arith.constant 0 : index
    %159 = vector.load %arg4[%c0_72, %c0_73] : memref<16x128xf32, #tpu.memory_space<vmem>>, vector<16x128xf32>
    %160 = arith.addf %158, %159 : vector<16x128xf32>
    %cst_74 = arith.constant 0.000000e+00 : f32
    %161 = vector.broadcast %cst_74 : f32 to vector<16x128xf32>
    %c0_75 = arith.constant 0 : index
    %c0_76 = arith.constant 0 : index
    %c0_77 = arith.constant 0 : index
    %162 = vector.load %arg5[%c0_75, %c0_76, %c0_77] : memref<8x16x128xf32, #tpu.memory_space<vmem>>, vector<1x16x128xf32>
    %163 = vector.shape_cast %162 : vector<1x16x128xf32> to vector<16x128xf32>
    %c7_i32 = arith.constant 7 : i32
    %164 = tpu.dynamic_rotate %160 by %c7_i32 dim 1 : vector<16x128xf32>, i32 -> vector<16x128xf32>
    %c7_i32_78 = arith.constant 7 : i32
    %165 = vector.broadcast %c7_i32_78 : i32 to vector<16x128xi32>
    %166 = arith.cmpi sge, %33, %165 : vector<16x128xi32>
    %cst_79 = arith.constant 0.000000e+00 : f32
    %167 = vector.broadcast %cst_79 : f32 to vector<16x128xf32>
    %168 = arith.select %166, %164, %167 : vector<16x128xi1>, vector<16x128xf32>
    %169 = arith.mulf %163, %168 : vector<16x128xf32>
    %170 = arith.addf %161, %169 : vector<16x128xf32>
    %c1_80 = arith.constant 1 : index
    %c0_81 = arith.constant 0 : index
    %c0_82 = arith.constant 0 : index
    %171 = vector.load %arg5[%c1_80, %c0_81, %c0_82] : memref<8x16x128xf32, #tpu.memory_space<vmem>>, vector<1x16x128xf32>
    %172 = vector.shape_cast %171 : vector<1x16x128xf32> to vector<16x128xf32>
    %c6_i32 = arith.constant 6 : i32
    %173 = tpu.dynamic_rotate %160 by %c6_i32 dim 1 : vector<16x128xf32>, i32 -> vector<16x128xf32>
    %c6_i32_83 = arith.constant 6 : i32
    %174 = vector.broadcast %c6_i32_83 : i32 to vector<16x128xi32>
    %175 = arith.cmpi sge, %33, %174 : vector<16x128xi32>
    %cst_84 = arith.constant 0.000000e+00 : f32
    %176 = vector.broadcast %cst_84 : f32 to vector<16x128xf32>
    %177 = arith.select %175, %173, %176 : vector<16x128xi1>, vector<16x128xf32>
    %178 = arith.mulf %172, %177 : vector<16x128xf32>
    %179 = arith.addf %170, %178 : vector<16x128xf32>
    %c2_85 = arith.constant 2 : index
    %c0_86 = arith.constant 0 : index
    %c0_87 = arith.constant 0 : index
    %180 = vector.load %arg5[%c2_85, %c0_86, %c0_87] : memref<8x16x128xf32, #tpu.memory_space<vmem>>, vector<1x16x128xf32>
    %181 = vector.shape_cast %180 : vector<1x16x128xf32> to vector<16x128xf32>
    %c5_i32 = arith.constant 5 : i32
    %182 = tpu.dynamic_rotate %160 by %c5_i32 dim 1 : vector<16x128xf32>, i32 -> vector<16x128xf32>
    %c5_i32_88 = arith.constant 5 : i32
    %183 = vector.broadcast %c5_i32_88 : i32 to vector<16x128xi32>
    %184 = arith.cmpi sge, %33, %183 : vector<16x128xi32>
    %cst_89 = arith.constant 0.000000e+00 : f32
    %185 = vector.broadcast %cst_89 : f32 to vector<16x128xf32>
    %186 = arith.select %184, %182, %185 : vector<16x128xi1>, vector<16x128xf32>
    %187 = arith.mulf %181, %186 : vector<16x128xf32>
    %188 = arith.addf %179, %187 : vector<16x128xf32>
    %c3_90 = arith.constant 3 : index
    %c0_91 = arith.constant 0 : index
    %c0_92 = arith.constant 0 : index
    %189 = vector.load %arg5[%c3_90, %c0_91, %c0_92] : memref<8x16x128xf32, #tpu.memory_space<vmem>>, vector<1x16x128xf32>
    %190 = vector.shape_cast %189 : vector<1x16x128xf32> to vector<16x128xf32>
    %c4_i32_93 = arith.constant 4 : i32
    %191 = tpu.dynamic_rotate %160 by %c4_i32_93 dim 1 : vector<16x128xf32>, i32 -> vector<16x128xf32>
    %c4_i32_94 = arith.constant 4 : i32
    %192 = vector.broadcast %c4_i32_94 : i32 to vector<16x128xi32>
    %193 = arith.cmpi sge, %33, %192 : vector<16x128xi32>
    %cst_95 = arith.constant 0.000000e+00 : f32
    %194 = vector.broadcast %cst_95 : f32 to vector<16x128xf32>
    %195 = arith.select %193, %191, %194 : vector<16x128xi1>, vector<16x128xf32>
    %196 = arith.mulf %190, %195 : vector<16x128xf32>
    %197 = arith.addf %188, %196 : vector<16x128xf32>
    %c4_96 = arith.constant 4 : index
    %c0_97 = arith.constant 0 : index
    %c0_98 = arith.constant 0 : index
    %198 = vector.load %arg5[%c4_96, %c0_97, %c0_98] : memref<8x16x128xf32, #tpu.memory_space<vmem>>, vector<1x16x128xf32>
    %199 = vector.shape_cast %198 : vector<1x16x128xf32> to vector<16x128xf32>
    %c3_i32 = arith.constant 3 : i32
    %200 = tpu.dynamic_rotate %160 by %c3_i32 dim 1 : vector<16x128xf32>, i32 -> vector<16x128xf32>
    %c3_i32_99 = arith.constant 3 : i32
    %201 = vector.broadcast %c3_i32_99 : i32 to vector<16x128xi32>
    %202 = arith.cmpi sge, %33, %201 : vector<16x128xi32>
    %cst_100 = arith.constant 0.000000e+00 : f32
    %203 = vector.broadcast %cst_100 : f32 to vector<16x128xf32>
    %204 = arith.select %202, %200, %203 : vector<16x128xi1>, vector<16x128xf32>
    %205 = arith.mulf %199, %204 : vector<16x128xf32>
    %206 = arith.addf %197, %205 : vector<16x128xf32>
    %c5 = arith.constant 5 : index
    %c0_101 = arith.constant 0 : index
    %c0_102 = arith.constant 0 : index
    %207 = vector.load %arg5[%c5, %c0_101, %c0_102] : memref<8x16x128xf32, #tpu.memory_space<vmem>>, vector<1x16x128xf32>
    %208 = vector.shape_cast %207 : vector<1x16x128xf32> to vector<16x128xf32>
    %c2_i32_103 = arith.constant 2 : i32
    %209 = tpu.dynamic_rotate %160 by %c2_i32_103 dim 1 : vector<16x128xf32>, i32 -> vector<16x128xf32>
    %c2_i32_104 = arith.constant 2 : i32
    %210 = vector.broadcast %c2_i32_104 : i32 to vector<16x128xi32>
    %211 = arith.cmpi sge, %33, %210 : vector<16x128xi32>
    %cst_105 = arith.constant 0.000000e+00 : f32
    %212 = vector.broadcast %cst_105 : f32 to vector<16x128xf32>
    %213 = arith.select %211, %209, %212 : vector<16x128xi1>, vector<16x128xf32>
    %214 = arith.mulf %208, %213 : vector<16x128xf32>
    %215 = arith.addf %206, %214 : vector<16x128xf32>
    %c6 = arith.constant 6 : index
    %c0_106 = arith.constant 0 : index
    %c0_107 = arith.constant 0 : index
    %216 = vector.load %arg5[%c6, %c0_106, %c0_107] : memref<8x16x128xf32, #tpu.memory_space<vmem>>, vector<1x16x128xf32>
    %217 = vector.shape_cast %216 : vector<1x16x128xf32> to vector<16x128xf32>
    %c1_i32_108 = arith.constant 1 : i32
    %218 = tpu.dynamic_rotate %160 by %c1_i32_108 dim 1 : vector<16x128xf32>, i32 -> vector<16x128xf32>
    %c1_i32_109 = arith.constant 1 : i32
    %219 = vector.broadcast %c1_i32_109 : i32 to vector<16x128xi32>
    %220 = arith.cmpi sge, %33, %219 : vector<16x128xi32>
    %cst_110 = arith.constant 0.000000e+00 : f32
    %221 = vector.broadcast %cst_110 : f32 to vector<16x128xf32>
    %222 = arith.select %220, %218, %221 : vector<16x128xi1>, vector<16x128xf32>
    %223 = arith.mulf %217, %222 : vector<16x128xf32>
    %224 = arith.addf %215, %223 : vector<16x128xf32>
    %c7 = arith.constant 7 : index
    %c0_111 = arith.constant 0 : index
    %c0_112 = arith.constant 0 : index
    %225 = vector.load %arg5[%c7, %c0_111, %c0_112] : memref<8x16x128xf32, #tpu.memory_space<vmem>>, vector<1x16x128xf32>
    %226 = vector.shape_cast %225 : vector<1x16x128xf32> to vector<16x128xf32>
    %227 = arith.mulf %226, %160 : vector<16x128xf32>
    %228 = arith.addf %224, %227 : vector<16x128xf32>
    %c0_113 = arith.constant 0 : index
    %c0_114 = arith.constant 0 : index
    %229 = vector.load %arg6[%c0_113, %c0_114] : memref<16x128xf32, #tpu.memory_space<vmem>>, vector<16x128xf32>
    %230 = arith.addf %228, %229 : vector<16x128xf32>
    %cst_115 = arith.constant 0.000000e+00 : f32
    %231 = vector.broadcast %cst_115 : f32 to vector<16x128xf32>
    %232 = arith.maximumf %230, %231 : vector<16x128xf32>
    %c1_i32_116 = arith.constant 1 : i32
    %233 = tpu.dynamic_rotate %232 by %c1_i32_116 dim 1 : vector<16x128xf32>, i32 -> vector<16x128xf32>
    %c1_i32_117 = arith.constant 1 : i32
    %234 = vector.broadcast %c1_i32_117 : i32 to vector<16x128xi32>
    %235 = arith.cmpi sge, %33, %234 : vector<16x128xi32>
    %cst_118 = arith.constant 0.000000e+00 : f32
    %236 = vector.broadcast %cst_118 : f32 to vector<16x128xf32>
    %237 = arith.select %235, %233, %236 : vector<16x128xi1>, vector<16x128xf32>
    %238 = arith.addf %232, %237 : vector<16x128xf32>
    %c2_i32_119 = arith.constant 2 : i32
    %239 = tpu.dynamic_rotate %232 by %c2_i32_119 dim 1 : vector<16x128xf32>, i32 -> vector<16x128xf32>
    %c2_i32_120 = arith.constant 2 : i32
    %240 = vector.broadcast %c2_i32_120 : i32 to vector<16x128xi32>
    %241 = arith.cmpi sge, %33, %240 : vector<16x128xi32>
    %cst_121 = arith.constant 0.000000e+00 : f32
    %242 = vector.broadcast %cst_121 : f32 to vector<16x128xf32>
    %243 = arith.select %241, %239, %242 : vector<16x128xi1>, vector<16x128xf32>
    %244 = arith.addf %238, %243 : vector<16x128xf32>
    %c3_i32_122 = arith.constant 3 : i32
    %245 = tpu.dynamic_rotate %232 by %c3_i32_122 dim 1 : vector<16x128xf32>, i32 -> vector<16x128xf32>
    %c3_i32_123 = arith.constant 3 : i32
    %246 = vector.broadcast %c3_i32_123 : i32 to vector<16x128xi32>
    %247 = arith.cmpi sge, %33, %246 : vector<16x128xi32>
    %cst_124 = arith.constant 0.000000e+00 : f32
    %248 = vector.broadcast %cst_124 : f32 to vector<16x128xf32>
    %249 = arith.select %247, %245, %248 : vector<16x128xi1>, vector<16x128xf32>
    %250 = arith.addf %244, %249 : vector<16x128xf32>
    %c4_i32_125 = arith.constant 4 : i32
    %251 = tpu.dynamic_rotate %232 by %c4_i32_125 dim 1 : vector<16x128xf32>, i32 -> vector<16x128xf32>
    %c4_i32_126 = arith.constant 4 : i32
    %252 = vector.broadcast %c4_i32_126 : i32 to vector<16x128xi32>
    %253 = arith.cmpi sge, %33, %252 : vector<16x128xi32>
    %cst_127 = arith.constant 0.000000e+00 : f32
    %254 = vector.broadcast %cst_127 : f32 to vector<16x128xf32>
    %255 = arith.select %253, %251, %254 : vector<16x128xi1>, vector<16x128xf32>
    %256 = arith.addf %250, %255 : vector<16x128xf32>
    %c5_i32_128 = arith.constant 5 : i32
    %257 = tpu.dynamic_rotate %232 by %c5_i32_128 dim 1 : vector<16x128xf32>, i32 -> vector<16x128xf32>
    %c5_i32_129 = arith.constant 5 : i32
    %258 = vector.broadcast %c5_i32_129 : i32 to vector<16x128xi32>
    %259 = arith.cmpi sge, %33, %258 : vector<16x128xi32>
    %cst_130 = arith.constant 0.000000e+00 : f32
    %260 = vector.broadcast %cst_130 : f32 to vector<16x128xf32>
    %261 = arith.select %259, %257, %260 : vector<16x128xi1>, vector<16x128xf32>
    %262 = arith.addf %256, %261 : vector<16x128xf32>
    %c6_i32_131 = arith.constant 6 : i32
    %263 = tpu.dynamic_rotate %232 by %c6_i32_131 dim 1 : vector<16x128xf32>, i32 -> vector<16x128xf32>
    %c6_i32_132 = arith.constant 6 : i32
    %264 = vector.broadcast %c6_i32_132 : i32 to vector<16x128xi32>
    %265 = arith.cmpi sge, %33, %264 : vector<16x128xi32>
    %cst_133 = arith.constant 0.000000e+00 : f32
    %266 = vector.broadcast %cst_133 : f32 to vector<16x128xf32>
    %267 = arith.select %265, %263, %266 : vector<16x128xi1>, vector<16x128xf32>
    %268 = arith.addf %262, %267 : vector<16x128xf32>
    %c7_i32_134 = arith.constant 7 : i32
    %269 = tpu.dynamic_rotate %232 by %c7_i32_134 dim 1 : vector<16x128xf32>, i32 -> vector<16x128xf32>
    %c7_i32_135 = arith.constant 7 : i32
    %270 = vector.broadcast %c7_i32_135 : i32 to vector<16x128xi32>
    %271 = arith.cmpi sge, %33, %270 : vector<16x128xi32>
    %cst_136 = arith.constant 0.000000e+00 : f32
    %272 = vector.broadcast %cst_136 : f32 to vector<16x128xf32>
    %273 = arith.select %271, %269, %272 : vector<16x128xi1>, vector<16x128xf32>
    %274 = arith.addf %268, %273 : vector<16x128xf32>
    %c0_137 = arith.constant 0 : index
    %c0_138 = arith.constant 0 : index
    %275 = vector.load %arg7[%c0_137, %c0_138] : memref<16x16xf32, #tpu.memory_space<vmem>>, vector<16x16xf32>
    %cst_139 = arith.constant dense<0.000000e+00> : vector<16x128xf32>
    %276 = tpu.matmul %275, %274, %cst_139 {dimension_numbers = #tpu.dot_dimension_numbers<[1], [0], [0], [1], [0, 0, 1, 1], [], []>} : vector<16x16xf32>, vector<16x128xf32>, vector<16x128xf32> -> vector<16x128xf32>
    %c0_140 = arith.constant 0 : index
    %c0_141 = arith.constant 0 : index
    %277 = vector.load %arg8[%c0_140, %c0_141] : memref<16x128xf32, #tpu.memory_space<vmem>>, vector<16x128xf32>
    %278 = arith.addf %276, %277 : vector<16x128xf32>
    %cst_142 = arith.constant dense<0xFF800000> : vector<128xf32>
    %279 = vector.multi_reduction <maximumf>, %278, %cst_142 [0] : vector<16x128xf32> to vector<128xf32>
    %280 = vector.shape_cast %279 : vector<128xf32> to vector<1x128xf32>
    %281 = vector.broadcast %280 : vector<1x128xf32> to vector<16x128xf32>
    %282 = arith.subf %278, %281 : vector<16x128xf32>
    %283 = math.exp %282 : vector<16x128xf32>
    %cst_143 = arith.constant dense<0.000000e+00> : vector<128xf32>
    %284 = vector.multi_reduction <add>, %283, %cst_143 [0] : vector<16x128xf32> to vector<128xf32>
    %285 = vector.shape_cast %284 : vector<128xf32> to vector<1x128xf32>
    %286 = vector.broadcast %285 : vector<1x128xf32> to vector<16x128xf32>
    %287 = arith.divf %283, %286 : vector<16x128xf32>
    %cst_144 = arith.constant 0.000000e+00 : f32
    %288 = vector.broadcast %cst_144 : f32 to vector<16x128xf32>
    %289 = arith.maximumf %160, %288 : vector<16x128xf32>
    %290 = arith.mulf %287, %289 : vector<16x128xf32>
    %c0_145 = arith.constant 0 : index
    %c0_146 = arith.constant 0 : index
    %291 = vector.load %arg9[%c0_145, %c0_146] : memref<16x128xf32, #tpu.memory_space<vmem>>, vector<16x128xf32>
    tpu.vector_store %arg9[%c0_145, %c0_146], %290 {strides = array<i32>} : memref<16x128xf32, #tpu.memory_space<vmem>>, vector<16x128xf32>,
    return
  }
}

</mosaic_0001>

<bundles_post_ra>
// kernel: conv_att_forward.1
= control target key start
LH: loop header
LB: loop body
LE: loop exit
PB: predicated region body
PF: predicated region fallthrough
CT: control target
= control target key end

     0   :  { %14 = vsyncpa [#allocation4], 0  ;;  %s1053_s0 = inlined_call_operand.vmem [shape: f32[8,128], index: 0, kind: input, shape index: {}]   ;;  %s1054_s1 = inlined_call_operand.vmem [shape: f32[2,5], index: 1, kind: input, shape index: {}]   ;;  %s1055_s2 = inlined_call_operand.vmem [shape: f32[2], index: 2, kind: input, shape index: {}]   ;;  %s1056_s3 = inlined_call_operand.vmem [shape: f32[16,192], index: 3, kind: input, shape index: {}]   ;;  %s1057_s4 = inlined_call_operand.vmem [shape: f32[16,128], index: 4, kind: input, shape index: {}]   ;;  %s1058_s5 = inlined_call_operand.vmem [shape: f32[8,16,128], index: 5, kind: input, shape index: {}]   ;;  %s1059_s6 = inlined_call_operand.vmem [shape: f32[16,128], index: 6, kind: input, shape index: {}]   ;;  %s1060_s7 = inlined_call_operand.vmem [shape: f32[16,16], index: 7, kind: input, shape index: {}]   ;;  %s1061_s8 = inlined_call_operand.vmem [shape: f32[16,128], index: 8, kind: input, shape index: {}]   ;;  %s1062_s9 = inlined_call_operand.vmem [shape: f32[16,128], index: 9, kind: output, shape index: {}]  }
   0x1   :  { %s23_s11 = sshll.u32 %s1054_s1, 4  ;;  %s24_s11 = int_to_ptr.vmem [resolvable:$true] %s23_s11 }
   0x2   :  { %15 = vsyncpa [#allocation6], 0  ;;  %s32_s14 = sshll.u32 %s1055_s2, 4  ;;  %s646_s15 = smov [#allocation3]   ;;  %s33_s14 = int_to_ptr.vmem [resolvable:$true] %s32_s14 }
   0x3   :  { %26 = dma.vmem_to_smem %s24_s11, 32, %s646_s15, [#allocation4]  }
   0x4   :  { %s647_s16 = smov [#allocation5]  }
   0x5   :  { %35 = dma.vmem_to_smem %s33_s14, 16, %s647_s16, [#allocation6]  }
   0x6   :  { %642 = dma.done.wait [#allocation4], 32  }
   0x7   :  { %643 = vsyncadd [#allocation4], 4294967264 }
   0x8   :  { %644 = dma.done.wait [#allocation6], 16  }
   0x9   :  { %645 = vsyncadd [#allocation6], 4294967280 }
   0xa   :  { %56 = sfence }
   0xb   :  { %v71_v0 = vld [vmem:[%s1053_s0] sm:$0xff]  ;;  %s648_s1 = smov 2   ;;  %s649_s19 = smov 127   ;;  %v57_v1 = vlaneseq  ;;  %v212_v59 = vld [vmem:[%s1056_s3 + $0x10] sm:$0xff]  ;;  %v211_v61 = vld [vmem:[%s1056_s3 + $0x8] sm:$0xff]  ;;  %vm240_vm8 = vcmask 523264  }
   0xc   :  { %72 = vrot.lane.b32.xlu0 %v71_v0, %s648_s1  ;;  %80 = vrot.lane.b32.xlu1 %v71_v0, %s649_s19  ;;  %s650_s2 = smov 1   ;;  %s651_s20 = smov 126   ;;  %v210_v58 = vld [vmem:[%s1056_s3] sm:$0xff]  ;;  %v213_v63 = vld [vmem:[%s1056_s3 + $0x18] sm:$0xff]  ;;  %vm460_vm13 = vcmask 130048  }
   0xd   :  { %s723_s21 = sld [smem:[#allocation3]]  ;;  %v58_v2 = vand.u32 127, %v57_v1  ;;  %s652_s11 = smov 4  }
   0xe   :  { %s725_s22 = sld [smem:[#allocation3 + $0x80]]  ;;  %s653_s12 = smov 120  }
   0xf   :  { %s727_s23 = sld [smem:[#allocation3 + $0x3]]  ;;  %v733_v4 = vand.u32 63, %v58_v2  ;;  %s654_s13 = smov 8  }
  0x10   :  { %s729_s0 = sld [smem:[#allocation3 + $0x1]]  ;;  %s655_s14 = smov 124  }
  0x11   :  { %s539_s24 = sld [smem:[#allocation3 + $0x2]]  ;;  %vm74_vm0 = vcmp.ge.s32.totalorder %v733_v4, 2  ;;  %vm82_vm1 = vcmp.lt.s32.totalorder %v733_v4, 63  ;;  %vm78_vm2 = vcmp.ge.s32.totalorder %v733_v4, 1  ;;  %vm86_vm3 = vcmp.lt.s32.totalorder %v733_v4, 62  ;;  %s657_s3 = smov 7  }
  0x12   :  { %s544_s25 = sld [smem:[#allocation3 + $0x82]]  ;;  %vm174_vm4 = vcmp.ge.s32.totalorder %v733_v4, 4  ;;  %vm205_vm5 = vcmp.lt.s32.totalorder %v733_v4, 56  ;;  %vm194_vm6 = vcmp.ge.s32.totalorder %v733_v4, 8  ;;  %vm185_vm7 = vcmp.lt.s32.totalorder %v733_v4, 60 }
  0x13   :  { %s731_s26 = sld [smem:[#allocation3 + $0x81]]  ;;  %v89_v6 = vstv %s723_s21  ;;  %vm313_vm9 = vcmp.ge.s32.totalorder %v733_v4, 6  ;;  %vm299_vm10 = vcmp.ge.s32.totalorder %v733_v4, 7  ;;  %vm327_vm11 = vcmp.ge.s32.totalorder %v733_v4, 5 }
  0x14   :  { %76 = vrot.lane.b32.xlu0 %v71_v0, %s650_s2  ;;  %84 = vrot.lane.b32.xlu1 %v71_v0, %s651_s20  ;;  %s735_s27 = sld [smem:[#allocation3 + $0x83]]  ;;  %v112_v9 = vstv %s725_s22  ;;  %vm354_vm12 = vcmp.ge.s32.totalorder %v733_v4, 3  ;;  %v458_v4 = vld [vmem:[%s1061_s8] sm:$0xff] }
  0x15   :  { %s737_s28 = sld [smem:[#allocation3 + $0x4]]  ;;  %v101_v13 = vstv %s727_s23 }
  0x16   :  { %s739_s29 = sld [smem:[#allocation3 + $0x84]]  ;;  %v93_v11 = vstv %s729_s0 }
  0x17   :  { %v97_v7 = vstv %s539_s24  ;;  %s108_s30 = sld [smem:[#allocation5]] }
  0x18   :  { %v120_v8 = vstv %s544_s25  ;;  %v98_v19 = vmul.f32 %v97_v7, %v71_v0  ;;  %s547_s10 = sld [smem:[#allocation5 + $0x1]] }
  0x19   :  { %v116_v12 = vstv %s731_s26  ;;  %v121_v20 = vmul.f32 %v120_v8, %v71_v0  ;;  %v238_v0 = vld [vmem:[%s1057_s4] sm:$0xff]  ;;  %s656_s26 = smov 6  }
  0x1a   :  { %v124_v14 = vstv %s735_s27  ;;  %s659_s27 = smov 5  }
  0x1b   :  { %v105_v25 = vstv %s737_s28 }
  0x1c   :  { %v128_v26 = vstv %s739_s29 }
  0x1d   :  { %v109_v38 = vstv %s108_s30 }
  0x1e   :  { %v132_v39 = vstv %s547_s10 }
  0x7e   :  { %v73_v3 = vpop.permute.xlu0 %72  ;;  %v81_v5 = vpop.permute.xlu1 %80 }
  0x7f   :  { %v75_v10 = vsel %vm74_vm0, %v73_v3, 0.0  ;;  %v83_v17 = vsel %vm82_vm1, %v81_v5, 0.0 }
  0x80   :  { %v90_v21 = vmul.f32 %v89_v6, %v75_v10  ;;  %v113_v22 = vmul.f32 %v112_v9, %v75_v10  ;;  %v102_v30 = vmul.f32 %v101_v13, %v83_v17  ;;  %v125_v31 = vmul.f32 %v124_v14, %v83_v17  ;;  %v239_v6 = vld [vmem:[%s1057_s4 + $0x8] sm:$0xff]  ;;  %s658_s4 = smov 3  }
  0x86   :  { %v77_v15 = vpop.permute.xlu0 %76  ;;  %v85_v16 = vpop.permute.xlu1 %84 }
  0x87   :  { %v79_v18 = vsel %vm78_vm2, %v77_v15, 0.0  ;;  %v87_v27 = vsel %vm86_vm3, %v85_v16, 0.0 }
  0x88   :  { %v94_v23 = vmul.f32 %v93_v11, %v79_v18  ;;  %v117_v24 = vmul.f32 %v116_v12, %v79_v18  ;;  %v106_v34 = vmul.f32 %v105_v25, %v87_v27  ;;  %v129_v35 = vmul.f32 %v128_v26, %v87_v27  ;;  %v293_v18 = vld [vmem:[%s1058_s5] sm:$0xff] }
  0x89   :  { %v552_v27 = vld [vmem:[%s1058_s5 + $0x20] sm:$0xff] }
  0x8a   :  { %v95_v28 = vadd.f32 %v94_v23, %v90_v21  ;;  %v118_v29 = vadd.f32 %v117_v24, %v113_v22  ;;  %v550_v22 = vld [vmem:[%s1058_s5 + $0x10] sm:$0xff]  ;;  %v294_v23 = vld [vmem:[%s1058_s5 + $0x8] sm:$0xff] }
  0x8c   :  { %v99_v32 = vadd.f32 %v98_v19, %v95_v28  ;;  %v122_v33 = vadd.f32 %v121_v20, %v118_v29  ;;  %v551_v20 = vld [vmem:[%s1058_s5 + $0x18] sm:$0xff]  ;;  %v553_v29 = vld [vmem:[%s1058_s5 + $0x28] sm:$0xff] }
  0x8e   :  { %v103_v36 = vadd.f32 %v102_v30, %v99_v32  ;;  %v126_v37 = vadd.f32 %v125_v31, %v122_v33 }
  0x90   :  { %v107_v40 = vadd.f32 %v106_v34, %v103_v36  ;;  %v130_v41 = vadd.f32 %v129_v35, %v126_v37 }
  0x92   :  { %v761_v42 = vadd.f32 %v109_v38, %v107_v40  ;;  %v763_v43 = vadd.f32 %v132_v39, %v130_v41  ;;  %v554_v41 = vld [vmem:[%s1058_s5 + $0x30] sm:$0xff] }
  0x94   :  { %164 = vrot.lane.b32.xlu0 %v763_v43, %s651_s20  ;;  %172 = vrot.lane.b32.xlu2 %v763_v43, %s652_s11 }
  0x95   :  { %247 = vmatpush.msra.mxu0 %v763_v43  ;;  %582 = vmatpush.msra.mxu3 %v763_v43 }
  0x96   :  { %162 = vrot.lane.b32.xlu1 %v761_v42, %s651_s20 }
  0x97   :  { %248 = vmatpush.msra.mxu0 %v761_v42  ;;  %583 = vmatpush.msra.mxu3 %v761_v42 }
  0x9c   :  { %203 = vrot.lane.b32.xlu0 %v763_v43, %s653_s12  ;;  %170 = vrot.lane.b32.xlu2 %v761_v42, %s652_s11 }
  0x9e   :  { %152 = vrot.lane.b32.xlu1 %v761_v42, %s648_s1 }
  0xa4   :  { %146 = vrot.lane.b32.xlu0 %v763_v43, %s649_s19  ;;  %154 = vrot.lane.b32.xlu2 %v763_v43, %s648_s1 }
  0xa6   :  { %144 = vrot.lane.b32.xlu1 %v761_v42, %s649_s19 }
  0xac   :  { %190 = vrot.lane.b32.xlu0 %v761_v42, %s654_s13  ;;  %201 = vrot.lane.b32.xlu2 %v761_v42, %s653_s12 }
  0xae   :  { %136 = vrot.lane.b32.xlu1 %v763_v43, %s650_s2 }
  0xb4   :  { %134 = vrot.lane.b32.xlu0 %v761_v42, %s650_s2  ;;  %192 = vrot.lane.b32.xlu2 %v763_v43, %s654_s13 }
  0xb6   :  { %181 = vrot.lane.b32.xlu1 %v761_v42, %s655_s14 }
  0xbc   :  { %183 = vrot.lane.b32.xlu2 %v763_v43, %s655_s14 }
  0xee   :  { %v173_v44 = vpop.permute.xlu2 %172 }
  0xef   :  { %566 = vmatpush.msk.msra.mxu0 %vm174_vm4, %v173_v44  ;;  %584 = vmatpush.msk.msra.mxu3 %vm174_vm4, %v173_v44 }
  0xf6   :  { %v171_v45 = vpop.permute.xlu2 %170 }
  0xf7   :  { %567 = vmatpush.msk.msra.mxu0 %vm174_vm4, %v171_v45  ;;  %585 = vmatpush.msk.msra.mxu3 %vm174_vm4, %v171_v45 }
  0xfe   :  { %v155_v46 = vpop.permute.xlu2 %154 }
 0x106   :  { %v165_v47 = vpop.permute.xlu0 %164  ;;  %v202_v49 = vpop.permute.xlu2 %201 }
 0x107   :  { %568 = vmatpush.msk.msra.mxu0 %vm86_vm3, %v165_v47  ;;  %586 = vmatpush.msk.msra.mxu3 %vm86_vm3, %v165_v47 }
 0x108   :  { %v163_v48 = vpop.permute.xlu1 %162 }
 0x109   :  { %569 = vmatpush.msk.msra.mxu0 %vm86_vm3, %v163_v48  ;;  %587 = vmatpush.msk.msra.mxu3 %vm86_vm3, %v163_v48 }
 0x10b   :  { %253 = vmatpush.msra.mxu0 %v763_v43  ;;  %588 = vmatpush.msra.mxu3 %v763_v43 }
 0x10d   :  { %254 = vmatpush.msra.mxu0 %v761_v42  ;;  %589 = vmatpush.msra.mxu3 %v761_v42 }
 0x10e   :  { %v204_v50 = vpop.permute.xlu0 %203  ;;  %v193_v53 = vpop.permute.xlu2 %192 }
 0x10f   :  { %570 = vmatpush.msk.msra.mxu0 %vm74_vm0, %v155_v46  ;;  %590 = vmatpush.msk.msra.mxu3 %vm74_vm0, %v155_v46 }
 0x110   :  { %v153_v51 = vpop.permute.xlu1 %152  ;;  %576 = vmatpush.msk.msra.mxu1 %vm205_vm5, %v204_v50 }
 0x111   :  { %571 = vmatpush.msk.msra.mxu0 %vm74_vm0, %v153_v51  ;;  %591 = vmatpush.msk.msra.mxu3 %vm74_vm0, %v153_v51 }
 0x112   :  { %577 = vmatpush.msk.msra.mxu1 %vm205_vm5, %v202_v49  ;;  %v556_v49 = vld [vmem:[%s1058_s5 + $0x40] sm:$0xff] }
 0x114   :  { %280 = vmatpush.msra.mxu1 %v763_v43 }
 0x116   :  { %281 = vmatpush.msra.mxu1 %v761_v42  ;;  %v147_v52 = vpop.permute.xlu0 %146  ;;  %v184_v57 = vpop.permute.xlu2 %183 }
 0x117   :  { %572 = vmatpush.msk.msra.mxu0 %vm82_vm1, %v147_v52  ;;  %592 = vmatpush.msk.msra.mxu3 %vm82_vm1, %v147_v52 }
 0x118   :  { %v145_v54 = vpop.permute.xlu1 %144  ;;  %578 = vmatpush.msk.msra.mxu1 %vm194_vm6, %v193_v53  ;;  %v557_v53 = vld [vmem:[%s1058_s5 + $0x48] sm:$0xff] }
 0x119   :  { %573 = vmatpush.msk.msra.mxu0 %vm82_vm1, %v145_v54  ;;  %593 = vmatpush.msk.msra.mxu3 %vm82_vm1, %v145_v54 }
 0x11b   :  { %259 = vmatpush.msra.mxu0 %v763_v43  ;;  %594 = vmatpush.msra.mxu3 %v763_v43  ;;  %v555_v43 = vld [vmem:[%s1058_s5 + $0x38] sm:$0xff] }
 0x11d   :  { %260 = vmatpush.msra.mxu0 %v761_v42  ;;  %595 = vmatpush.msra.mxu3 %v761_v42 }
 0x11e   :  { %v191_v55 = vpop.permute.xlu0 %190 }
 0x11f   :  { %579 = vmatpush.msk.msra.mxu1 %vm194_vm6, %v191_v55  ;;  %v559_v55 = vld [vmem:[%s1058_s5 + $0x58] sm:$0xff] }
 0x120   :  { %v137_v56 = vpop.permute.xlu1 %136 }
 0x121   :  { %574 = vmatpush.msk.msra.mxu0 %vm78_vm2, %v137_v56  ;;  %596 = vmatpush.msk.msra.mxu3 %vm78_vm2, %v137_v56 }
 0x122   :  { %580 = vmatpush.msk.msra.mxu1 %vm185_vm7, %v184_v57  ;;  %v558_v57 = vld [vmem:[%s1058_s5 + $0x50] sm:$0xff] }
 0x126   :  { %v135_v60 = vpop.permute.xlu0 %134 }
 0x127   :  { %575 = vmatpush.msk.msra.mxu0 %vm78_vm2, %v135_v60  ;;  %597 = vmatpush.msk.msra.mxu3 %vm78_vm2, %v135_v60 }
 0x128   :  { %v182_v62 = vpop.permute.xlu1 %181  ;;  %263 = vmatmul.f32.vlgmr.msra.gmra.mxu0 %v210_v58  ;;  %266 = vmatmul.f32.vlgmr.msra.gmra.mxu3 %v212_v59 }
 0x129   :  { %581 = vmatpush.msk.msra.mxu1 %vm185_vm7, %v182_v62 }
 0x12a   :  { %548 = vmatmul.msk.f32.vlgmr.msra.gmra.mxu1 %vm240_vm8, %v211_v61 }
 0x132   :  { %549 = vmatmul.msk.f32.gmra.mxu1 %vm240_vm8, %v213_v63 }
 0x1a5   :  { %v264_v1 = vpop.f32.mrf.mxu0 }
 0x1a6   :  { %v265_v2 = vadd.f32 %v264_v1, %v238_v0 }
 0x1a7   :  { %v287_v3 = vpop.f32.mrf.mxu1 }
 0x1a8   :  { %v868_v5 = vadd.f32 %v287_v3, %v265_v2  ;;  %v560_v2 = vld [vmem:[%s1058_s5 + $0x60] sm:$0xff] }
 0x1aa   :  { %337 = vrot.lane.b32.xlu0 %v868_v5, %s652_s11  ;;  %309 = vrot.lane.b32.xlu2 %v868_v5, %s656_s26 }
 0x1ab   :  { %295 = vrot.lane.b32.xlu1 %v868_v5, %s657_s3  ;;  %v267_v7 = vpop.f32.mrf.mxu3 }
 0x1ac   :  { %v268_v8 = vadd.f32 %v267_v7, %v239_v6 }
 0x1af   :  { %v290_v9 = vpop.f32.mrf.mxu1 }
 0x1b0   :  { %v879_v10 = vadd.f32 %v290_v9, %v268_v8  ;;  %v561_v8 = vld [vmem:[%s1058_s5 + $0x68] sm:$0xff] }
 0x1b2   :  { %311 = vrot.lane.b32.xlu0 %v879_v10, %s656_s26  ;;  %350 = vrot.lane.b32.xlu2 %v868_v5, %s658_s4 }
 0x1b3   :  { %323 = vrot.lane.b32.xlu1 %v868_v5, %s659_s27 }
 0x1ba   :  { %325 = vrot.lane.b32.xlu0 %v879_v10, %s659_s27  ;;  %297 = vrot.lane.b32.xlu2 %v879_v10, %s657_s3 }
 0x1bb   :  { %352 = vrot.lane.b32.xlu1 %v879_v10, %s658_s4 }
 0x1c2   :  { %366 = vrot.lane.b32.xlu0 %v879_v10, %s648_s1  ;;  %339 = vrot.lane.b32.xlu2 %v879_v10, %s652_s11 }
 0x1c3   :  { %364 = vrot.lane.b32.xlu1 %v868_v5, %s648_s1 }
 0x1ca   :  { %377 = vrot.lane.b32.xlu0 %v868_v5, %s650_s2  ;;  %379 = vrot.lane.b32.xlu2 %v879_v10, %s650_s2 }
 0x204   :  { %v310_v11 = vpop.permute.xlu2 %309 }
 0x205   :  { %v314_v25 = vsel %vm313_vm9, %v310_v11, 0.0  ;;  %v562_v11 = vld [vmem:[%s1058_s5 + $0x70] sm:$0xff] }
 0x206   :  { %v316_v34 = vmul.f32 %v550_v22, %v314_v25 }
 0x20c   :  { %v351_v12 = vpop.permute.xlu2 %350 }
 0x20d   :  { %v355_v50 = vsel %vm354_vm12, %v351_v12, 0.0 }
 0x20e   :  { %v357_v61 = vmul.f32 %v556_v49, %v355_v50 }
 0x214   :  { %v298_v17 = vpop.permute.xlu2 %297 }
 0x215   :  { %v301_v26 = vsel %vm299_vm10, %v298_v17, 0.0 }
 0x216   :  { %v303_v35 = vmul.f32 %v301_v26, %v294_v23 }
 0x21c   :  { %v338_v13 = vpop.permute.xlu0 %337  ;;  %v340_v36 = vpop.permute.xlu2 %339 }
 0x21d   :  { %v296_v14 = vpop.permute.xlu1 %295  ;;  %v341_v42 = vsel %vm174_vm4, %v338_v13, 0.0  ;;  %v342_v44 = vsel %vm174_vm4, %v340_v36, 0.0 }
 0x21e   :  { %v300_v19 = vsel %vm299_vm10, %v296_v14, 0.0  ;;  %v343_v51 = vmul.f32 %v554_v41, %v341_v42  ;;  %v344_v52 = vmul.f32 %v555_v43, %v342_v44 }
 0x21f   :  { %v302_v32 = vmul.f32 %v300_v19, %v293_v18  ;;  %v390_v18 = vmul.f32 %v562_v11, %v868_v5  ;;  %v563_v19 = vld [vmem:[%s1058_s5 + $0x78] sm:$0xff]  ;;  %v456_v11 = vld [vmem:[%s1060_s7] sm:$0xff] }
 0x220   :  { %v391_v23 = vmul.f32 %v563_v19, %v879_v10 }
 0x221   :  { %v318_v39 = vadd.f32 %v316_v34, %v302_v32 }
 0x224   :  { %v312_v15 = vpop.permute.xlu0 %311  ;;  %v380_v62 = vpop.permute.xlu2 %379 }
 0x225   :  { %v324_v16 = vpop.permute.xlu1 %323  ;;  %v315_v21 = vsel %vm313_vm9, %v312_v15, 0.0  ;;  %v382_v9 = vsel %vm78_vm2, %v380_v62, 0.0 }
 0x226   :  { %v328_v28 = vsel %vm327_vm11, %v324_v16, 0.0  ;;  %v317_v33 = vmul.f32 %v551_v20, %v315_v21  ;;  %v384_v16 = vmul.f32 %v561_v8, %v382_v9  ;;  %v394_v20 = vld [vmem:[%s1059_s6] sm:$0xff] }
 0x227   :  { %v330_v37 = vmul.f32 %v552_v27, %v328_v28  ;;  %v395_v27 = vld [vmem:[%s1059_s6 + $0x8] sm:$0xff] }
 0x228   :  { %v319_v40 = vadd.f32 %v317_v33, %v303_v35 }
 0x229   :  { %v332_v45 = vadd.f32 %v330_v37, %v318_v39 }
 0x22b   :  { %v345_v59 = vadd.f32 %v343_v51, %v332_v45 }
 0x22c   :  { %v326_v24 = vpop.permute.xlu0 %325 }
 0x22d   :  { %v329_v30 = vsel %vm327_vm11, %v326_v24, 0.0  ;;  %v353_v31 = vpop.permute.xlu1 %352  ;;  %v359_v6 = vadd.f32 %v357_v61, %v345_v59 }
 0x22e   :  { %v331_v38 = vmul.f32 %v553_v29, %v329_v30  ;;  %v356_v54 = vsel %vm354_vm12, %v353_v31, 0.0 }
 0x22f   :  { %v358_v63 = vmul.f32 %v557_v53, %v356_v54 }
 0x230   :  { %v333_v46 = vadd.f32 %v331_v38, %v319_v40 }
 0x232   :  { %v346_v60 = vadd.f32 %v344_v52, %v333_v46 }
 0x234   :  { %v367_v47 = vpop.permute.xlu0 %366  ;;  %v360_v3 = vadd.f32 %v358_v63, %v346_v60 }
 0x235   :  { %v365_v48 = vpop.permute.xlu1 %364  ;;  %v369_v56 = vsel %vm74_vm0, %v367_v47, 0.0 }
 0x236   :  { %v368_v58 = vsel %vm74_vm0, %v365_v48, 0.0  ;;  %v371_v0 = vmul.f32 %v559_v55, %v369_v56 }
 0x237   :  { %v370_v1 = vmul.f32 %v558_v57, %v368_v58 }
 0x238   :  { %v373_v13 = vadd.f32 %v371_v0, %v360_v3 }
 0x239   :  { %v372_v14 = vadd.f32 %v370_v1, %v359_v6 }
 0x23a   :  { %v386_v21 = vadd.f32 %v384_v16, %v373_v13 }
 0x23c   :  { %v378_v7 = vpop.permute.xlu0 %377  ;;  %v393_v25 = vadd.f32 %v391_v23, %v386_v21 }
 0x23d   :  { %v381_v12 = vsel %vm78_vm2, %v378_v7, 0.0 }
 0x23e   :  { %v383_v15 = vmul.f32 %v560_v2, %v381_v12  ;;  %v397_v28 = vadd.f32 %v395_v27, %v393_v25  ;;  %v457_v12 = vld [vmem:[%s1060_s7 + $0x8] sm:$0xff] }
 0x240   :  { %v385_v17 = vadd.f32 %v383_v15, %v372_v14  ;;  %v399_v29 = vmax.f32 %v397_v28, 0.0  ;;  %v459_v14 = vld [vmem:[%s1061_s8 + $0x8] sm:$0xff] }
 0x242   :  { %v392_v22 = vadd.f32 %v390_v18, %v385_v17 }
 0x244   :  { %v396_v24 = vadd.f32 %v394_v20, %v392_v22 }
 0x246   :  { %v398_v26 = vmax.f32 %v396_v24, 0.0 }
 0x248   :  { %416 = vrot.lane.b32.xlu0 %v398_v26, %s658_s4  ;;  %408 = vrot.lane.b32.xlu1 %v398_v26, %s648_s1 }
 0x249   :  { %400 = vrot.lane.b32.xlu2 %v398_v26, %s650_s2 }
 0x250   :  { %410 = vrot.lane.b32.xlu0 %v399_v29, %s648_s1  ;;  %432 = vrot.lane.b32.xlu1 %v398_v26, %s659_s27 }
 0x251   :  { %424 = vrot.lane.b32.xlu2 %v398_v26, %s652_s11 }
 0x258   :  { %434 = vrot.lane.b32.xlu0 %v399_v29, %s659_s27  ;;  %402 = vrot.lane.b32.xlu1 %v399_v29, %s650_s2 }
 0x259   :  { %418 = vrot.lane.b32.xlu2 %v399_v29, %s658_s4 }
 0x260   :  { %440 = vrot.lane.b32.xlu0 %v398_v26, %s656_s26  ;;  %426 = vrot.lane.b32.xlu1 %v399_v29, %s652_s11 }
 0x261   :  { %442 = vrot.lane.b32.xlu2 %v399_v29, %s656_s26 }
 0x268   :  { %450 = vrot.lane.b32.xlu1 %v399_v29, %s657_s3 }
 0x269   :  { %448 = vrot.lane.b32.xlu2 %v398_v26, %s657_s3 }
 0x2a3   :  { %v401_v30 = vpop.permute.xlu2 %400 }
 0x2a4   :  { %v404_v37 = vsel %vm78_vm2, %v401_v30, 0.0 }
 0x2a5   :  { %v406_v42 = vadd.f32 %v404_v37, %v398_v26 }
 0x2ab   :  { %v425_v33 = vpop.permute.xlu2 %424 }
 0x2ac   :  { %v428_v56 = vsel %vm174_vm4, %v425_v33, 0.0 }
 0x2b3   :  { %v419_v36 = vpop.permute.xlu2 %418 }
 0x2b4   :  { %v421_v48 = vsel %vm354_vm12, %v419_v36, 0.0 }
 0x2ba   :  { %v417_v31 = vpop.permute.xlu0 %416  ;;  %v409_v32 = vpop.permute.xlu1 %408 }
 0x2bb   :  { %v412_v40 = vsel %vm74_vm0, %v409_v32, 0.0  ;;  %v443_v47 = vpop.permute.xlu2 %442  ;;  %v420_v49 = vsel %vm354_vm12, %v417_v31, 0.0 }
 0x2bc   :  { %v414_v45 = vadd.f32 %v412_v40, %v406_v42  ;;  %v445_v63 = vsel %vm313_vm9, %v443_v47, 0.0 }
 0x2be   :  { %v422_v50 = vadd.f32 %v420_v49, %v414_v45 }
 0x2c0   :  { %v430_v59 = vadd.f32 %v428_v56, %v422_v50  ;;  %v526_v50 = vmax.f32 %v868_v5, 0.0 }
 0x2c2   :  { %v411_v34 = vpop.permute.xlu0 %410  ;;  %v433_v35 = vpop.permute.xlu1 %432 }
 0x2c3   :  { %v413_v44 = vsel %vm74_vm0, %v411_v34, 0.0  ;;  %v436_v57 = vsel %vm327_vm11, %v433_v35, 0.0  ;;  %v449_v0 = vpop.permute.xlu2 %448 }
 0x2c4   :  { %v438_v62 = vadd.f32 %v436_v57, %v430_v59  ;;  %v452_v8 = vsel %vm299_vm10, %v449_v0, 0.0 }
 0x2ca   :  { %v435_v38 = vpop.permute.xlu0 %434  ;;  %v403_v39 = vpop.permute.xlu1 %402 }
 0x2cb   :  { %v405_v41 = vsel %vm78_vm2, %v403_v39, 0.0  ;;  %v437_v58 = vsel %vm327_vm11, %v435_v38, 0.0 }
 0x2cc   :  { %v407_v43 = vadd.f32 %v405_v41, %v399_v29 }
 0x2ce   :  { %v415_v46 = vadd.f32 %v413_v44, %v407_v43 }
 0x2d0   :  { %v423_v52 = vadd.f32 %v421_v48, %v415_v46 }
 0x2d2   :  { %v427_v51 = vpop.permute.xlu1 %426  ;;  %v441_v54 = vpop.permute.xlu0 %440 }
 0x2d3   :  { %v429_v53 = vsel %vm174_vm4, %v427_v51, 0.0  ;;  %v444_v61 = vsel %vm313_vm9, %v441_v54, 0.0  ;;  %v527_v51 = vmax.f32 %v879_v10, 0.0 }
 0x2d4   :  { %v431_v55 = vadd.f32 %v429_v53, %v423_v52  ;;  %v446_v1 = vadd.f32 %v444_v61, %v438_v62 }
 0x2d6   :  { %v439_v60 = vadd.f32 %v437_v58, %v431_v55  ;;  %v454_v9 = vadd.f32 %v452_v8, %v446_v1 }
 0x2d8   :  { %v447_v3 = vadd.f32 %v445_v63, %v439_v60 }
 0x2da   :  { %v451_v2 = vpop.permute.xlu1 %450 }
 0x2db   :  { %v453_v6 = vsel %vm299_vm10, %v451_v2, 0.0 }
 0x2dc   :  { %v455_v7 = vadd.f32 %v453_v6, %v447_v3 }
 0x2de   :  { %481 = vmatpush.msra.mxu2 %v455_v7 }
 0x2e0   :  { %482 = vmatpush.msra.mxu2 %v454_v9 }
 0x2e1   :  { %564 = vmatmul.msk.f32.vlgmr.msra.gmra.mxu2 %vm460_vm13, %v456_v11 }
 0x2e9   :  { %565 = vmatmul.msk.f32.gmra.mxu2 %vm460_vm13, %v457_v12 }
 0x364   :  { %v484_v13 = vpop.f32.mrf.mxu2 }
 0x365   :  { %v485_v16 = vadd.f32 %v484_v13, %v458_v4 }
 0x36c   :  { %v487_v15 = vpop.f32.mrf.mxu2 }
 0x36d   :  { %v488_v17 = vadd.f32 %v487_v15, %v459_v14 }
 0x36f   :  { %v490_v18 = vmax.f32 %v485_v16, %v488_v17 }
 0x371   :  { %v491_v19 = vrot.slane %v490_v18, 4 }
 0x373   :  { %v492_v20 = vmax.f32 %v490_v18, %v491_v19 }
 0x375   :  { %v493_v21 = vrot.slane %v492_v20, 2 }
 0x377   :  { %v494_v22 = vmax.f32 %v492_v20, %v493_v21 }
 0x379   :  { %v495_v23 = vrot.slane %v494_v22, 1 }
 0x37b   :  { %v496_v24 = vmax.f32 %v494_v22, %v495_v23 }
 0x37d   :  { %v497_v25 = vsub.f32 %v485_v16, %v496_v24  ;;  %v498_v26 = vsub.f32 %v488_v17, %v496_v24 }
 0x37f   :  { %v499_v27 = vmul.f32 1.442695, %v497_v25  ;;  %v501_v28 = vmul.f32 1.442695, %v498_v26 }
 0x381   :  { %612 = vpow2.f32 %v499_v27 }
 0x382   :  { %614 = vpow2.f32 %v501_v28 }
 0x387   :  { %v613_v29 = vpop.eup %612 }
 0x388   :  { %v615_v30 = vpop.eup %614 }
 0x389   :  { %v503_v31 = vadd.f32 %v615_v30, %v613_v29 }
 0x38b   :  { %v504_v32 = vrot.slane %v503_v31, 4 }
 0x38d   :  { %v505_v33 = vadd.f32 %v504_v32, %v503_v31 }
 0x38f   :  { %v506_v34 = vrot.slane %v505_v33, 2 }
 0x391   :  { %v507_v35 = vadd.f32 %v506_v34, %v505_v33 }
 0x393   :  { %v508_v36 = vrot.slane %v507_v35, 1 }
 0x395   :  { %v509_v37 = vadd.f32 %v508_v36, %v507_v35 }
 0x397   :  { %616 = vrcp.f32 %v509_v37  ;;  %v521_v41 = vand.u32 2147483648, %v509_v37  ;;  %v519_v43 = vand.u32 2147483647, %v509_v37  ;;  %vm515_vm15 = vweird.f32 %v509_v37 }
 0x399   :  { %v522_v45 = vor.u32 1.1754944e-38, %v521_v41  ;;  %vm520_vm1 = vcmp.eq.f32.partialorder %v519_v43, 8.507059e+37 }
 0x39d   :  { %v617_v38 = vpop.eup %616 }
 0x39e   :  { %v511_v39 = vmul.f32 %v617_v38, %v509_v37  ;;  %vm516_vm14 = vweird.f32 %v617_v38 }
 0x39f   :  { %vm517_vm0 = vmor %vm515_vm15, %vm516_vm14 }
 0x3a0   :  { %v512_v40 = vsub.f32 1.0, %v511_v39 }
 0x3a2   :  { %v513_v42 = vmul.f32 %v617_v38, %v512_v40 }
 0x3a4   :  { %v514_v44 = vadd.f32 %v617_v38, %v513_v42 }
 0x3a6   :  { %v518_v46 = vsel %vm517_vm0, %v617_v38, %v514_v44 }
 0x3a7   :  { %v523_v47 = vsel %vm520_vm1, %v522_v45, %v518_v46 }
 0x3a8   :  { %v524_v48 = vmul.f32 %v613_v29, %v523_v47  ;;  %v525_v49 = vmul.f32 %v615_v30, %v523_v47 }
 0x3aa   :  { %v528_v52 = vmul.f32 %v526_v50, %v524_v48  ;;  %v529_v53 = vmul.f32 %v527_v51, %v525_v49 }
 0x3ac   :  { %530 = vst [vmem:[%s1062_s9] sm:$0xff] %v528_v52 }
 0x3ad   :  { %531 = vst [vmem:[%s1062_s9 + $0x8] sm:$0xff] %v529_v53 }
 0x3ae   :  { %536 = vsyncpa [#allocation4], 1 }
 0x3af   :  { %537 = vsyncpa [#allocation6], 1 }

</bundles_post_ra>
